<compile_context>
chip_gen: v7x
topology: tpu7x:2x2x1
jax: 0.10.0
libtpu: 0.0.40
codegen_flags: <defaults>
</compile_context>

<pallas_src>
import functools

import jax
import jax.numpy as jnp
from jax.experimental import pallas as pl
from jax.experimental.pallas import tpu as pltpu


_KNEE_BYTES = 2 << 20  # ~2 MiB per-buffer tile: measured HBM-roofline knee.


# --------------------------- fused single-pass kernel ---------------------------
def _se_fused_kernel(x_ref, w1_ref, b1_ref, w2_ref, b2_ref, o_ref):
    # x_ref: (Bt, C, H*W), lane dim = H*W.
    hw = x_ref.shape[-1]

    # Squeeze: global average pool; f32 widen fused into the reduction
    # (no full-tile f32 temporary in VMEM).
    pooled = jnp.sum(x_ref[...], axis=-1, dtype=jnp.float32) * (1.0 / hw)  # (Bt, C)

    # Excitation: fc1 -> ReLU -> fc2 -> sigmoid (f32; negligible vs HBM traffic).
    h = jnp.dot(pooled, w1_ref[...], preferred_element_type=jnp.float32) + b1_ref[...]
    h = jnp.maximum(h, 0.0)
    s = jnp.dot(h, w2_ref[...], preferred_element_type=jnp.float32) + b2_ref[...]
    s = jax.nn.sigmoid(s)                                                  # (Bt, C)

    # Scale: broadcast per-channel gate over the spatial (lane) axis, in the
    # input dtype (no full-tile up-cast; bf16 gate rounded once).
    o_ref[...] = (x_ref[...] * s.astype(o_ref.dtype)[:, :, None]).astype(o_ref.dtype)


# ----------------------- two-pass fallback kernels (P3) -------------------------
def _se_pool_kernel(x_ref, sum_ref):
    # x_ref: (1, C, thw); sum_ref: (1, 1, C) f32 accumulator, resident across
    # the spatial ("arbitrary") grid axis.
    @pl.when(pl.program_id(1) == 0)
    def _():
        sum_ref[...] = jnp.zeros_like(sum_ref)

    sum_ref[...] += jnp.sum(x_ref[...], axis=-1, dtype=jnp.float32)[:, None, :]


def _se_scale_kernel(pooled_ref, w1_ref, b1_ref, w2_ref, b2_ref, x_ref, o_ref, *, hw):
    # pooled_ref: (1, 1, C) f32 spatial sums; x_ref/o_ref: (1, C, thw).
    pooled = pooled_ref[0] * (1.0 / hw)                                    # (1, C)
    h = jnp.dot(pooled, w1_ref[...], preferred_element_type=jnp.float32) + b1_ref[...]
    h = jnp.maximum(h, 0.0)
    s = jnp.dot(h, w2_ref[...], preferred_element_type=jnp.float32) + b2_ref[...]
    s = jax.nn.sigmoid(s)                                                  # (1, C)
    o_ref[...] = (x_ref[...] * s.astype(o_ref.dtype)[:, :, None]).astype(o_ref.dtype)


# ------------------------------ tiling heuristics --------------------------------
def _tpu_generation():
    """Returns (vmem_budget_bytes, vmem_limit_cap_bytes, tensorcores_per_chip)."""
    phys = 128 << 20
    try:
        phys = int(pltpu.get_tpu_info().vmem_capacity_bytes)
    except Exception:
        pass
    if phys <= (64 << 20):
        # v7x-class: 64 MiB VMEM per TC, 2 TensorCores share the chip.
        return int(phys * 0.375), 32 << 20, 2
    # v5e / v6e-class: 128 MiB VMEM, single TensorCore.
    return int(phys * 0.375), 96 << 20, 1


def _choose_batch_tile(B, C, HW, itemsize, budget_bytes, num_cores):
    """Pick the batch tile Bt (a divisor of B).

    * Hard cap: double-buffered in+out tiles (4x) must fit the VMEM budget.
    * On multi-TC chips prefer step counts that split evenly across cores with
      >= 2 steps per core (falling back to >= 1 per core, then anything).
    * Among the remaining candidates, pick the *smallest* Bt whose per-buffer
      tile is past the ~2 MiB bandwidth knee (more steps -> deeper pipeline);
      if no candidate reaches the knee, take the largest.
    Returns 0 if even Bt=1 does not fit (caller takes the two-pass path).
    """
    per_batch = C * HW * itemsize
    bt_max = budget_bytes // (4 * per_batch)
    if bt_max < 1:
        return 0

    divisors = [d for d in range(1, B + 1) if B % d == 0 and d <= bt_max]

    if num_cores > 1:
        def steps(d):
            return B // d
        tier1 = [d for d in divisors
                 if steps(d) % num_cores == 0 and steps(d) >= 2 * num_cores]
        tier2 = [d for d in divisors
                 if steps(d) % num_cores == 0 and steps(d) >= num_cores]
        divisors = tier1 or tier2 or divisors

    past_knee = [d for d in divisors if d * per_batch >= _KNEE_BYTES]
    return min(past_knee) if past_knee else max(divisors)


def _choose_spatial_tile(C, HW, itemsize, budget_bytes, min_chunks=1):
    """Spatial chunk (divisor of HW) for the two-pass path: double-buffered
    in+out chunks fit the budget; prefers chunks past the bandwidth knee, then
    lane-dense (multiple of 128), then larger."""
    cap = budget_bytes // (4 * C * itemsize)
    if min_chunks > 1:
        cap = min(cap, max(1, HW // min_chunks))
    if cap < 1:
        raise ValueError(
            "SEBlock: a single spatial column of C channels does not fit the "
            "VMEM budget; reduce C or raise vmem_budget_bytes.")
    best = None
    best_key = None
    for t in range(1, HW + 1):
        if HW % t or t > cap:
            continue
        key = (min(t * C * itemsize, _KNEE_BYTES), t % 128 == 0, t)
        if best is None or key > best_key:
            best, best_key = t, key
    return best


# ------------------------------------ wrapper ------------------------------------
def se_block(x, w1, b1, w2, b2, *, vmem_budget_bytes=None):
    """x: (B, C, H, W); w1: (C, HID); b1: (1, HID); w2: (HID, C); b2: (1, C).

    Weights are stored pre-transposed relative to the PyTorch Conv2d params:
    fc1.weight (HID, C, 1, 1) -> (C, HID), fc2.weight (C, HID, 1, 1) -> (HID, C).
    """
    B, C, H, W = x.shape
    HID = w1.shape[1]
    HW = H * W
    itemsize = x.dtype.itemsize

    budget, limit_cap, num_cores = _tpu_generation()
    if vmem_budget_bytes is not None:
        budget = int(vmem_budget_bytes)

    # Metadata-only reshape for contiguous NCHW: lane dim = H*W.
    x2 = x.reshape(B, C, HW)

    weight_bytes = (w1.size * w1.dtype.itemsize + b1.size * b1.dtype.itemsize
                    + w2.size * w2.dtype.itemsize + b2.size * b2.dtype.itemsize)

    bt = _choose_batch_tile(B, C, HW, itemsize, budget, num_cores)
    grid_steps = (B // bt) if bt else 0

    # Two-pass when a single slab does not fit, or when a 2-TC chip would be
    # left with fewer grid steps than cores (e.g. B == 1 on v7x).
    use_two_pass = (bt == 0) or (num_cores > 1 and grid_steps < num_cores and HW >= 2 * num_cores)

    if not use_two_pass:
        tile_bytes = bt * C * HW * itemsize
        vmem_limit = int(min(max(4 * tile_bytes + 2 * weight_bytes + (2 << 20),
                                 16 << 20), limit_cap))
        out = pl.pallas_call(
            _se_fused_kernel,
            out_shape=jax.ShapeDtypeStruct((B, C, HW), x.dtype),
            grid=(grid_steps,),
            in_specs=[
                pl.BlockSpec((bt, C, HW), lambda b: (b, 0, 0)),
                # Constant index_maps -> Pallas keeps the weights resident
                # (no per-step re-DMA).
                pl.BlockSpec((C, HID), lambda b: (0, 0)),
                pl.BlockSpec((1, HID), lambda b: (0, 0)),
                pl.BlockSpec((HID, C), lambda b: (0, 0)),
                pl.BlockSpec((1, C), lambda b: (0, 0)),
            ],
            out_specs=pl.BlockSpec((bt, C, HW), lambda b: (b, 0, 0)),
            compiler_params=pltpu.CompilerParams(
                dimension_semantics=("parallel",),
                vmem_limit_bytes=vmem_limit,
            ),
        )(x2, w1, b1, w2, b2)
        return out.reshape(B, C, H, W)

    # ---------------- two-pass fallback: pool pass + scale pass ----------------
    min_chunks = num_cores if B < num_cores else 1
    thw = _choose_spatial_tile(C, HW, itemsize, budget, min_chunks=min_chunks)
    n_sp = HW // thw
    chunk_bytes = C * thw * itemsize
    vmem_limit = int(min(max(4 * chunk_bytes + 2 * weight_bytes + (2 << 20),
                             16 << 20), limit_cap))

    pooled = pl.pallas_call(
        _se_pool_kernel,
        out_shape=jax.ShapeDtypeStruct((B, 1, C), jnp.float32),
        grid=(B, n_sp),
        in_specs=[pl.BlockSpec((1, C, thw), lambda b, s: (b, 0, s))],
        out_specs=pl.BlockSpec((1, 1, C), lambda b, s: (b, 0, 0)),
        compiler_params=pltpu.CompilerParams(
            dimension_semantics=("parallel", "arbitrary"),
            vmem_limit_bytes=vmem_limit,
        ),
    )(x2)

    out = pl.pallas_call(
        functools.partial(_se_scale_kernel, hw=HW),
        out_shape=jax.ShapeDtypeStruct((B, C, HW), x.dtype),
        grid=(B, n_sp),
        in_specs=[
            pl.BlockSpec((1, 1, C), lambda b, s: (b, 0, 0)),
            pl.BlockSpec((C, HID), lambda b, s: (0, 0)),
            pl.BlockSpec((1, HID), lambda b, s: (0, 0)),
            pl.BlockSpec((HID, C), lambda b, s: (0, 0)),
            pl.BlockSpec((1, C), lambda b, s: (0, 0)),
            pl.BlockSpec((1, C, thw), lambda b, s: (b, 0, s)),
        ],
        out_specs=pl.BlockSpec((1, C, thw), lambda b, s: (b, 0, s)),
        compiler_params=pltpu.CompilerParams(
            dimension_semantics=("parallel", "parallel"),
            vmem_limit_bytes=vmem_limit,
        ),
    )(pooled, w1, b1, w2, b2, x2)
    return out.reshape(B, C, H, W)


def se_block_reference(x, w1, b1, w2, b2):
    """Pure-JAX reference matching the PyTorch forward."""
    pooled = jnp.mean(x.astype(jnp.float32), axis=(2, 3))      # (B, C)
    h = jnp.maximum(pooled @ w1 + b1, 0.0)                     # (B, HID)
    s = jax.nn.sigmoid(h @ w2 + b2)                            # (B, C)
    return (x.astype(jnp.float32) * s[:, :, None, None]).astype(x.dtype)


if __name__ == "__main__":
    B, C, H, W = 2, 4, 16, 16
    HID = 8  # hidden_dim of the SEBlock

    key = jax.random.PRNGKey(0)
    kx, kw1, kb1, kw2, kb2 = jax.random.split(key, 5)

    x = jax.random.normal(kx, (B, C, H, W), dtype=jnp.float32)

    # Deterministic parameters (shapes match nn.Conv2d(C, HID, 1) / (HID, C, 1)),
    # stored transposed for the kernel.
    bound1 = 1.0 / (C ** 0.5)
    w1 = jax.random.uniform(kw1, (C, HID), jnp.float32, -bound1, bound1)
    b1 = jax.random.uniform(kb1, (1, HID), jnp.float32, -bound1, bound1)
    bound2 = 1.0 / (HID ** 0.5)
    w2 = jax.random.uniform(kw2, (HID, C), jnp.float32, -bound2, bound2)
    b2 = jax.random.uniform(kb2, (1, C), jnp.float32, -bound2, bound2)

    ref = se_block_reference(x, w1, b1, w2, b2)

    # Fused single-pass path.
    out = jax.block_until_ready(se_block(x, w1, b1, w2, b2))
    assert out.shape == (B, C, H, W)
    assert jnp.allclose(out, ref, atol=1e-5, rtol=1e-5), "fused path mismatch"

    # Force the two-pass (pool + scale) fallback with a tiny VMEM budget to
    # exercise the oversized-slab path as well.
    out2 = jax.block_until_ready(se_block(x, w1, b1, w2, b2, vmem_budget_bytes=8 << 10))
    assert jnp.allclose(out2, ref, atol=1e-5, rtol=1e-5), "two-pass path mismatch"

    print("KERNEL_OK")
</pallas_src>

<mosaic_0001>
module attributes {stable_mosaic.version = 11 : i64} {
  func.func @_se_fused_kernel(%arg0: i32, %arg1: memref<2x4x256xf32, #tpu.memory_space<vmem>>, %arg2: memref<4x8xf32, #tpu.memory_space<vmem>>, %arg3: memref<1x8xf32, #tpu.memory_space<vmem>>, %arg4: memref<8x4xf32, #tpu.memory_space<vmem>>, %arg5: memref<1x4xf32, #tpu.memory_space<vmem>>, %arg6: memref<2x4x256xf32, #tpu.memory_space<vmem>>) attributes {dimension_semantics = [#tpu.dimension_semantics<parallel>], iteration_bounds = array<i64: 1>, scalar_prefetch = 0 : i64, scratch_operands = 0 : i64, tpu.core_type = #tpu.core_type<tc>, window_params = [{transform_indices = @transform_0, window_bounds = array<i64: 2, 4, 256>}, {pipeline_mode = #tpu.pipeline_mode<synchronous>, transform_indices = @transform_1, window_bounds = array<i64: 4, 8>}, {pipeline_mode = #tpu.pipeline_mode<synchronous>, transform_indices = @transform_2, window_bounds = array<i64: 1, 8>}, {pipeline_mode = #tpu.pipeline_mode<synchronous>, transform_indices = @transform_3, window_bounds = array<i64: 8, 4>}, {pipeline_mode = #tpu.pipeline_mode<synchronous>, transform_indices = @transform_4, window_bounds = array<i64: 1, 4>}, {transform_indices = @transform_5, window_bounds = array<i64: 2, 4, 256>}]} {
    %c0 = arith.constant 0 : index
    %c0_0 = arith.constant 0 : index
    %c0_1 = arith.constant 0 : index
    %0 = vector.load %arg1[%c0, %c0_0, %c0_1] : memref<2x4x256xf32, #tpu.memory_space<vmem>>, vector<2x4x256xf32>
    %cst = arith.constant dense<0.000000e+00> : vector<2x4xf32>
    %1 = vector.multi_reduction <add>, %0, %cst [2] : vector<2x4x256xf32> to vector<2x4xf32>
    %cst_2 = arith.constant 3.906250e-03 : f32
    %2 = vector.broadcast %cst_2 : f32 to vector<2x4xf32>
    %3 = arith.mulf %1, %2 : vector<2x4xf32>
    %c0_3 = arith.constant 0 : index
    %c0_4 = arith.constant 0 : index
    %4 = vector.load %arg2[%c0_3, %c0_4] : memref<4x8xf32, #tpu.memory_space<vmem>>, vector<4x8xf32>
    %cst_5 = arith.constant dense<0.000000e+00> : vector<2x8xf32>
    %5 = tpu.matmul %3, %4, %cst_5 {dimension_numbers = #tpu.dot_dimension_numbers<[1], [0], [0], [1], [0, 0, 1, 1], [], []>} : vector<2x4xf32>, vector<4x8xf32>, vector<2x8xf32> -> vector<2x8xf32>
    %c0_6 = arith.constant 0 : index
    %c0_7 = arith.constant 0 : index
    %6 = vector.load %arg3[%c0_6, %c0_7] : memref<1x8xf32, #tpu.memory_space<vmem>>, vector<1x8xf32>
    %7 = vector.broadcast %6 : vector<1x8xf32> to vector<2x8xf32>
    %8 = arith.addf %5, %7 : vector<2x8xf32>
    %cst_8 = arith.constant 0.000000e+00 : f32
    %9 = vector.broadcast %cst_8 : f32 to vector<2x8xf32>
    %10 = arith.maximumf %8, %9 : vector<2x8xf32>
    %c0_9 = arith.constant 0 : index
    %c0_10 = arith.constant 0 : index
    %11 = vector.load %arg4[%c0_9, %c0_10] : memref<8x4xf32, #tpu.memory_space<vmem>>, vector<8x4xf32>
    %cst_11 = arith.constant dense<0.000000e+00> : vector<2x4xf32>
    %12 = tpu.matmul %10, %11, %cst_11 {dimension_numbers = #tpu.dot_dimension_numbers<[1], [0], [0], [1], [0, 0, 1, 1], [], []>} : vector<2x8xf32>, vector<8x4xf32>, vector<2x4xf32> -> vector<2x4xf32>
    %c0_12 = arith.constant 0 : index
    %c0_13 = arith.constant 0 : index
    %13 = vector.load %arg5[%c0_12, %c0_13] : memref<1x4xf32, #tpu.memory_space<vmem>>, vector<1x4xf32>
    %14 = vector.broadcast %13 : vector<1x4xf32> to vector<2x4xf32>
    %15 = arith.addf %12, %14 : vector<2x4xf32>
    %16 = arith.negf %15 : vector<2x4xf32>
    %17 = math.exp %16 : vector<2x4xf32>
    %cst_14 = arith.constant 1.000000e+00 : f32
    %18 = vector.broadcast %cst_14 : f32 to vector<2x4xf32>
    %19 = arith.addf %18, %17 : vector<2x4xf32>
    %20 = arith.divf %18, %19 : vector<2x4xf32>
    %c0_15 = arith.constant 0 : index
    %c0_16 = arith.constant 0 : index
    %c0_17 = arith.constant 0 : index
    %21 = vector.load %arg1[%c0_15, %c0_16, %c0_17] : memref<2x4x256xf32, #tpu.memory_space<vmem>>, vector<2x4x256xf32>
    %22 = vector.shape_cast %20 : vector<2x4xf32> to vector<2x4x1xf32>
    %23 = vector.broadcast %22 : vector<2x4x1xf32> to vector<2x4x256xf32>
    %24 = arith.mulf %21, %23 : vector<2x4x256xf32>
    %c0_18 = arith.constant 0 : index
    %c0_19 = arith.constant 0 : index
    %c0_20 = arith.constant 0 : index
    %25 = vector.load %arg6[%c0_18, %c0_19, %c0_20] : memref<2x4x256xf32, #tpu.memory_space<vmem>>, vector<2x4x256xf32>
    tpu.vector_store %arg6[%c0_18, %c0_19, %c0_20], %24 {strides = array<i32>} : memref<2x4x256xf32, #tpu.memory_space<vmem>>, vector<2x4x256xf32>,
    return
  }
  func.func @transform_0(%arg0: i32) -> (i32, i32, i32) {
    %c0_i32 = arith.constant 0 : i32
    %c0_i32_0 = arith.constant 0 : i32
    %c0_i32_1 = arith.constant 0 : i32
    return %arg0, %c0_i32, %c0_i32_0 : i32, i32, i32
  }
  func.func @transform_1(%arg0: i32) -> (i32, i32) {
    %c0_i32 = arith.constant 0 : i32
    %c0_i32_0 = arith.constant 0 : i32
    %c0_i32_1 = arith.constant 0 : i32
    return %c0_i32, %c0_i32_0 : i32, i32
  }
  func.func @transform_2(%arg0: i32) -> (i32, i32) {
    %c0_i32 = arith.constant 0 : i32
    %c0_i32_0 = arith.constant 0 : i32
    %c0_i32_1 = arith.constant 0 : i32
    return %c0_i32, %c0_i32_0 : i32, i32
  }
  func.func @transform_3(%arg0: i32) -> (i32, i32) {
    %c0_i32 = arith.constant 0 : i32
    %c0_i32_0 = arith.constant 0 : i32
    %c0_i32_1 = arith.constant 0 : i32
    return %c0_i32, %c0_i32_0 : i32, i32
  }
  func.func @transform_4(%arg0: i32) -> (i32, i32) {
    %c0_i32 = arith.constant 0 : i32
    %c0_i32_0 = arith.constant 0 : i32
    %c0_i32_1 = arith.constant 0 : i32
    return %c0_i32, %c0_i32_0 : i32, i32
  }
  func.func @transform_5(%arg0: i32) -> (i32, i32, i32) {
    %c0_i32 = arith.constant 0 : i32
    %c0_i32_0 = arith.constant 0 : i32
    %c0_i32_1 = arith.constant 0 : i32
    return %arg0, %c0_i32, %c0_i32_0 : i32, i32, i32
  }
}

</mosaic_0001>

<bundles_post_ra>
// kernel: tpu_custom_call.1
= control target key start
LH: loop header
LB: loop body
LE: loop exit
PB: predicated region body
PF: predicated region fallthrough
CT: control target
= control target key end

     0   :  { %10 = vsyncpa [#allocation3], 0  ;;  %s473_s0 = inlined_call_operand.hbm [shape: f32[2,4,256], index: 0, kind: input, shape index: {}]   ;;  %s474_s1 = inlined_call_operand.vmem [shape: f32[4,8], index: 1, kind: input, shape index: {}]   ;;  %s475_s2 = inlined_call_operand.vmem [shape: f32[1,8], index: 2, kind: input, shape index: {}]   ;;  %s476_s3 = inlined_call_operand.vmem [shape: f32[8,4], index: 3, kind: input, shape index: {}]   ;;  %s477_s4 = inlined_call_operand.vmem [shape: f32[1,4], index: 4, kind: input, shape index: {}]   ;;  %s478_s5 = inlined_call_operand.hbm [shape: f32[2,4,256], index: 5, kind: output, shape index: {}]  }
   0x1   :  { %11 = vsyncpa [#allocation4], 0  ;;  %s377_s18 = smov [#allocation2]   ;;  %s329_s22 = scalar_lea.hbm %s473_s0, 256 }
   0x2   :  { %s17_s19 = sshll.u32 %s377_s18, 4  ;;  %p330_p0 = scmp.ne.s32.totalorder %s473_s0, %s329_s22  ;;  %s18_s19 = int_to_ptr.vmem [resolvable:$true] %s17_s19 }
   0x3   :  { %p333_p1 = scmp.lt.u32.totalorder %s329_s22, %s473_s0 }
   0x5   :  { %p335_p2 = pnand %p333_p1, %p330_p0 }
   0x7   :  { %338 = shalt.err (!%p335_p2)
}
   0x8   :  { %s339_s27 = scalar_lea.vmem %s18_s19, 256  ;;  %p344_p4 = scmp.lt.s32.totalorder %s18_s19, %s18_s19 }
   0x9   :  { %p340_p3 = scmp.ne.s32.totalorder %s18_s19, %s339_s27  ;;  %p345_p5 = scmp.lt.s32.totalorder %s339_s27, %s339_s27 }
   0xb   :  { %p346_p6 = por %p345_p5, %p344_p4 }
   0xd   :  { %p347_p7 = pnand %p346_p6, %p340_p3 }
   0xf   :  { %350 = shalt.err (!%p347_p7)
}
  0x10   :  { %s378_s28 = smov 128   ;;  %s379_s29 = smov 8  }
  0x11   :  { %23 = dma.hbm_to_vmem [thread:$0]  %s473_s0, 256, %s18_s19, [#allocation3], %s378_s28, %s378_s28, %s379_s29  }
  0x12   :  { %373 = dma.done.wait [#allocation3], 256  }
  0x13   :  { %374 = vsyncadd [#allocation3], 4294967040  ;;  %vm43_vm0 = vcmask 1043456   ;;  %v429_v0 = vld [vmem:[#allocation2] sm:$0xff]  ;;  %v431_v1 = vld [vmem:[#allocation2 + $0x8] sm:$0xff]  ;;  %v380_v11 = vmov 0.0   ;;  %v66_v12 = vlaneseq }
  0x14   :  { %v39_v2 = vcombine.high %v429_v0, %v429_v0  ;;  %v44_v3 = vsel %vm43_vm0, %v429_v0, 0.0  ;;  %v40_v4 = vcombine.high %v431_v1, %v431_v1  ;;  %v49_v6 = vsel %vm43_vm0, %v431_v1, 0.0  ;;  %v56_v10 = vld [vmem:[%s474_s1] sm:$0xf]  ;;  %306 = vmatprep.subr.mxu0 %v380_v11  ;;  %311 = vmatprep.subr.mxu1 %v380_v11 }
  0x15   :  { %vm381_vm1 = vmmov 0   ;;  %307 = vmatpush3.msk.msra.mxu0 %vm43_vm0, %v56_v10  ;;  %v67_v13 = vand.u32 127, %v66_v12  ;;  %v69_v14 = vshrl.u32 %v66_v12, 7  ;;  %vm76_vm2 = vcmask 1041409   ;;  %v155_v23 = vld [vmem:[%s476_s3] sm:$0xff] }
  0x16   :  { %v45_v5 = vsel %vm43_vm0, %v39_v2, 0.0  ;;  %v50_v7 = vsel %vm43_vm0, %v40_v4, 0.0  ;;  %308 = vmatprep.mubr.msk.f32.mxu0 %vm381_vm1, %v380_v11  ;;  %313 = vmatprep.mubr.msk.f32.mxu1 %vm381_vm1, %v380_v11  ;;  %vm78_vm3 = vcmask 31744   ;;  %v296_v24 = vld [vmem:[%s475_s2] ss:$0 sm:$0xff]  ;;  %vm163_vm4 = vcmask 64512  }
  0x17   :  { %v46_v8 = vadd.f32 %v45_v5, %v44_v3  ;;  %v51_v9 = vadd.f32 %v50_v7, %v49_v6  ;;  %v70_v16 = vsub.s32 %v67_v13, %v69_v14  ;;  %312 = vmatpush3.msra.mxu1 %v155_v23  ;;  %v299_v29 = vld [vmem:[%s477_s4] ss:$0 sm:$0xff]  ;;  %v245_v36 = vsub.s32 0, %v69_v14  ;;  %s383_s2 = smov [#allocation5]  }
  0x18   :  { %v252_v39 = vsub.s32 1, %v69_v14  ;;  %v382_v41 = vmov 839922192   ;;  %s284_s3 = sshll.u32 %s383_s2, 4  ;;  %s285_s3 = int_to_ptr.vmem [resolvable:$true] %s284_s3 }
  0x19   :  { %47 = vadd.xlane.f32.xlu0 %v46_v8  ;;  %v260_v42 = vunpack.c.l.s4 %v382_v41  ;;  %s351_s4 = scalar_lea.vmem %s285_s3, 256  ;;  %p356_p9 = scmp.lt.s32.totalorder %s285_s3, %s285_s3 }
  0x1a   :  { %p352_p8 = scmp.ne.s32.totalorder %s285_s3, %s351_s4  ;;  %p357_p10 = scmp.lt.s32.totalorder %s351_s4, %s351_s4 }
  0x1b   :  { %v261_v43 = vunpack.c.0.s8 %v260_v42 }
  0x1c   :  { %p358_p11 = por %p357_p10, %p356_p9 }
  0x1d   :  { %52 = vadd.xlane.f32.xlu0 %v51_v9  ;;  %v264_v44 = vsub.s32 %v261_v43, %v69_v14 }
  0x1e   :  { %p359_p12 = pnand %p358_p11, %p352_p8 }
  0xa6   :  { %v48_v15 = vpop.xlane.xlu0 %47 }
  0xa7   :  { %v54_v17 = vmul.f32 0.00390625, %v48_v15 }
  0xa9   :  { %v71_v20 = vrot.slane %v54_v17, %v70_v16 }
  0xaa   :  { %v53_v18 = vpop.xlane.xlu0 %52 }
  0xab   :  { %v55_v19 = vmul.f32 0.00390625, %v53_v18 }
  0xad   :  { %v75_v21 = vrot.slane %v55_v19, %v70_v16 }
  0xaf   :  { %v77_v22 = vsel %vm76_vm2, %v75_v21, %v71_v20 }
  0xb0   :  { %309 = vmatmul.mubr.msk.f32.vlgmr.msra.gmra.mrb[0].mxu0 %vm78_vm3, %v77_v22 }
 0x183   :  { %v150_v25 = vpop.f32.mrb[0].mxu0 }
 0x184   :  { %v151_v26 = vadd.f32 %v296_v24, %v150_v25  ;;  %v310_v27 = vpop.f32.mrb[1].mxu0 }
 0x186   :  { %v154_v28 = vmax.f32 %v151_v26, 0.0 }
 0x188   :  { %314 = vmatmul.mubr.msk.f32.vlgmr.msra.gmra.mrb[0].mxu1 %vm163_vm4, %v154_v28 }
 0x25b   :  { %v233_v30 = vpop.f32.mrb[0].mxu1 }
 0x25c   :  { %v234_v31 = vadd.f32 %v299_v29, %v233_v30  ;;  %v315_v32 = vpop.f32.mrb[1].mxu1 }
 0x25e   :  { %v301_v33 = vmul.f32 -1.442695, %v234_v31 }
 0x260   :  { %325 = vpow2.f32 %v301_v33 }
 0x26a   :  { %v326_v34 = vpop.eup %325 }
 0x26b   :  { %v240_v35 = vadd.f32 1.0, %v326_v34 }
 0x26d   :  { %327 = vrcp.f32 %v240_v35 }
 0x277   :  { %v328_v37 = vpop.eup %327 }
 0x278   :  { %v246_v38 = vrot.slane %v328_v37, %v245_v36  ;;  %v253_v40 = vrot.slane %v328_v37, %v252_v39 }
 0x27a   :  { %248 = vbcast.lane.b32.xlu1 %v246_v38, 256 }
 0x27e   :  { %255 = vbcast.lane.b32.xlu1 %v253_v40, 256 }
 0x2ec   :  { %v249_v45 = vpop.permute.xlu1 %248 }
 0x2ed   :  { %v265_v46 = vrot.slane %v249_v45, %v264_v44 }
 0x2ef   :  { %v275_v47 = vmul.f32 %v265_v46, %v429_v0 }
 0x2f0   :  { %v256_v48 = vpop.permute.xlu1 %255 }
 0x2f1   :  { %277 = vst [vmem:[#allocation5] sm:$0xff] %v275_v47  ;;  %v272_v49 = vrot.slane %v256_v48, %v264_v44 }
 0x2f3   :  { %v276_v50 = vmul.f32 %v272_v49, %v431_v1 }
 0x2f5   :  { %278 = vst [vmem:[#allocation5 + $0x8] sm:$0xff] %v276_v50 }
 0x2f6   :  { %362 = shalt.err (!%p359_p12)
}
 0x2f7   :  { %s363_s15 = scalar_lea.hbm %s478_s5, 256 }
 0x2f8   :  { %p364_p13 = scmp.ne.s32.totalorder %s478_s5, %s363_s15  ;;  %p367_p0 = scmp.lt.u32.totalorder %s363_s15, %s478_s5 }
 0x2fa   :  { %p369_p1 = pnand %p367_p0, %p364_p13 }
 0x2fc   :  { %372 = shalt.err (!%p369_p1)
}
 0x2fd   :  { %290 = dma.vmem_to_hbm [thread:$0]  %s285_s3, 256, %s478_s5, [#allocation4], %s378_s28, %s378_s28, %s379_s29  }
 0x2fe   :  { %375 = dma.done.wait [#allocation4], 256  }
 0x2ff   :  { %376 = vsyncadd [#allocation4], 4294967040 }
 0x300   :  { %294 = vsyncpa [#allocation3], 1 }
 0x301   :  { %295 = vsyncpa [#allocation4], 1 }

</bundles_post_ra>
